<compile_context>
chip_gen: v7x
topology: tpu7x:2x2x1
jax: 0.10.0
libtpu: 0.0.40
codegen_flags: <defaults>
</compile_context>

<pallas_src>
import jax
import jax.numpy as jnp
from jax.experimental import pallas as pl
from jax.experimental.pallas import tpu as pltpu

BN_EPS = 1e-5


def _make_fp_kernel(num_layers, s_total, reassoc_l0):
    """num_layers MLP layers; s_total = S (static); reassoc_l0: layer-0 interpolation
    contribution was hoisted on the host as p2_proj = W0_int @ points2 (C0 < D2)."""
    # Bits needed to pack the neighbour row index into the low mantissa bits of the
    # (clamped, positive) fp32 distance; the <= 2^(nbits-23) relative quantization of the
    # min distance is negligible for the interpolation weights.
    nbits = max(1, (s_total - 1).bit_length())
    fused_argmin = nbits <= 12            # exact 2-reduction fallback for huge S
    low_mask = (1 << nbits) - 1

    def kernel(xyz1_ref, xyz2_ref, p1_ref, p2_ref, *rest):
        param_refs = rest[:-1]
        out_ref = rest[-1]

        x1 = xyz1_ref[0]                  # [3, T]  f32  (channels-first)
        x2 = xyz2_ref[0]                  # [S, 3]  f32  (channels-last, tiny)
        p1 = p1_ref[0]                    # [D1, T] bf16
        p2s = p2_ref[0]                   # [Cp, S] bf16 (points2, or hoisted projection)
        T = x1.shape[1]
        S = x2.shape[0]

        # ---- pairwise squared distances, [S, T] orientation --------------------------
        # d[s, t] = |x2[s] - x1[:, t]|^2 ; building everything transposed makes the
        # interpolation matmul below a plain NN bf16 matmul (no W transpose needed).
        sq1 = (x1[0:1, :] * x1[0:1, :] + x1[1:2, :] * x1[1:2, :]
               + x1[2:3, :] * x1[2:3, :])                                    # [1, T]
        sq2 = jnp.sum(x2 * x2, axis=-1, keepdims=True)                       # [S, 1]
        cross = jnp.dot(x2, x1, preferred_element_type=jnp.float32)          # [S, T]
        # Clamp at a tiny *normal* value: removes the negatives fp cancellation can
        # produce AND keeps the index-packed bit pattern out of the denormal range.
        d = jnp.maximum(sq2 + sq1 - 2.0 * cross, 1e-12)

        # ---- 3-NN inverse-distance weights (unnormalized), stored transposed [S, T] --
        row = jax.lax.broadcasted_iota(jnp.int32, (S, T), 0)
        W = jnp.zeros((S, T), jnp.float32)
        norm = jnp.zeros((1, T), jnp.float32)
        if fused_argmin:
            # Pack the row index into the low bits of the distance's bit pattern so one
            # min-reduction yields both the min distance and its argmin (f32 compare ==
            # int compare for positive normal values).
            bits = pltpu.bitcast(d, jnp.int32)
            state = pltpu.bitcast((bits & jnp.int32(~low_mask)) | row, jnp.float32)
        else:
            state = d
        for _ in range(3):
            if fused_argmin:
                kmin = jnp.min(state, axis=0, keepdims=True)                 # [1, T]
                kbits = pltpu.bitcast(kmin, jnp.int32)
                sel = kbits & jnp.int32(low_mask)                            # argmin row
                onehot = row == sel                                          # [S, T]
                mind = pltpu.bitcast(kbits - sel, jnp.float32)               # quantized min
            else:
                mind = jnp.min(state, axis=0, keepdims=True)
                first = jnp.min(jnp.where(state <= mind, row, S),
                                axis=0, keepdims=True)
                onehot = row == first
            state = jnp.where(onehot, jnp.float32(jnp.inf), state)           # drop picked NN
            recip = pl.reciprocal(mind + 1e-8, approx=True)                  # EUP slot
            W = jnp.where(onehot, recip, W)                                  # 1 select/elem
            norm = norm + recip                                              # [1, T]
        W16 = W.astype(jnp.bfloat16)                                         # bf16 MXU rhs

        # ---- MLP: (1x1 conv + folded BN + ReLU) stack, channels-first -----------------
        if reassoc_l0:
            w_p1_ref, b0_ref = param_refs[0], param_refs[1]
            next_base = 2
        else:
            w_p1_ref, w_int_ref, b0_ref = param_refs[0], param_refs[1], param_refs[2]
            next_base = 3

        y = jnp.dot(w_p1_ref[...], p1, preferred_element_type=jnp.float32)   # [C0, T]
        contrib = jnp.dot(p2s, W16, preferred_element_type=jnp.float32)      # [Cp, T]
        scale = pl.reciprocal(norm, approx=True)     # deferred 1/sum(recip) normalization
        if reassoc_l0:
            y = y + contrib * scale
        else:
            y = y + jnp.dot(w_int_ref[...], (contrib * scale).astype(jnp.bfloat16),
                            preferred_element_type=jnp.float32)
        feat = jnp.maximum(y + b0_ref[...], 0.0)

        for li in range(1, num_layers):
            base = next_base + 2 * (li - 1)
            w_ref = param_refs[base]
            b_ref = param_refs[base + 1]
            y = jnp.dot(w_ref[...], feat.astype(jnp.bfloat16),
                        preferred_element_type=jnp.float32)
            feat = jnp.maximum(y + b_ref[...], 0.0)

        out_ref[0] = feat.astype(out_ref.dtype)                              # [c_last, T]

    return kernel


def _vmem_policy():
    """Generation-aware sizing: (vmem_limit_bytes, temp_budget_bytes, tile_n cap)."""
    try:
        kind = jax.devices()[0].device_kind.lower()
    except Exception:
        kind = ""
    if "v6" in kind:
        # v6e: 128 MiB physical VMEM, two store slots -> large N-tiles pay off.
        return 96 << 20, 28 << 20, 1024
    if "v5" in kind:
        # v5e/v5p: 128 MiB VMEM but a single vector-store slot -> cap tiles at 512.
        return 96 << 20, 28 << 20, 512
    # v7x (64 MiB per TensorCore) or unknown generation: stay conservative.
    return 48 << 20, 12 << 20, 512


def _choose_tile_n(n_pad, s, budget_bytes, cap):
    """Largest power-of-two N-tile that divides the padded N, is a multiple of 128, and
    keeps the ~4 live [S, T] 4-byte temporaries of the 3-NN search inside budget."""
    budget_rows = budget_bytes // (16 * max(s, 1))
    cap = max(128, min(cap, (budget_rows // 128) * 128))
    tile = 128
    while tile * 2 <= cap and n_pad % (tile * 2) == 0:
        tile *= 2
    return tile


def pointnet_feature_propagation(xyz1, xyz2, points1, points2, params,
                                 out_dtype=jnp.float32):
    """
    xyz1: [B, 3, N]   xyz2: [B, 3, S]   points1: [B, D1, N]   points2: [B, D2, S]
    params: list of dicts {w:[C_out, C_in], b, gamma, beta, mean, var} per MLP layer
    returns: [B, C_last, N]   (same layout as the PyTorch module; out_dtype=bf16 halves
    the writeback if the consumer tolerates it)
    """
    # TODO(synk): the S == 1 (repeat) and points1-is-None branches of the PyTorch forward
    # are not implemented; this covers the S > 1 (S >= 3), points1-present path.
    B, _, N = xyz1.shape
    S = xyz2.shape[2]
    D1 = points1.shape[1]
    D2 = points2.shape[1]
    num_layers = len(params)
    c0, c_in0 = params[0]["w"].shape
    c_last = params[-1]["w"].shape[0]
    assert c_in0 == D1 + D2, (c_in0, D1, D2)
    reassoc_l0 = c0 < D2              # interpolate after conv0 when that is fewer FLOPs

    # Fold BatchNorm (eval) into the conv weights/bias on the host.
    folded = []
    for p in params:
        c_out, _ = p["w"].shape
        scale = p["gamma"].astype(jnp.float32) * jax.lax.rsqrt(
            p["var"].astype(jnp.float32) + BN_EPS)
        w_eff = p["w"].astype(jnp.float32) * scale[:, None]
        b_eff = ((p["b"].astype(jnp.float32) - p["mean"].astype(jnp.float32)) * scale
                 + p["beta"].astype(jnp.float32)).reshape(c_out, 1)
        folded.append((w_eff, b_eff))
    w0, b0 = folded[0]

    # Pad N to a multiple of 128: keeps output stores unmasked (lane-dense) and the
    # per-tile [S, T] temporaries bounded; the padded tail is sliced off afterwards.
    n_pad = ((N + 127) // 128) * 128
    if n_pad != N:
        pad = n_pad - N
        xyz1 = jnp.pad(xyz1, ((0, 0), (0, 0), (0, pad)))
        points1 = jnp.pad(points1, ((0, 0), (0, 0), (0, pad)))

    # Only the tiny xyz2 is transposed on the host; all other tensors keep the PyTorch
    # channels-first layout so their DMAs / stores are lane-dense.
    x1 = xyz1.astype(jnp.float32)                             # [B, 3, n_pad]
    x2 = jnp.transpose(xyz2, (0, 2, 1)).astype(jnp.float32)   # [B, S, 3]
    p1 = points1.astype(jnp.bfloat16)                         # [B, D1, n_pad]
    if reassoc_l0:
        # Hoist the reassociated layer-0 projection of points2 (batch-constant) to XLA:
        # removes one MXU pass per N-tile and shrinks the resident [*, S] operand.
        p2src = jnp.einsum("od,bds->bos", w0[:, D1:],
                           points2.astype(jnp.float32)).astype(jnp.bfloat16)
    else:
        p2src = points2.astype(jnp.bfloat16)
    c_p2 = p2src.shape[1]

    vmem_limit, budget, cap = _vmem_policy()
    tile_n = _choose_tile_n(n_pad, S, budget, cap)
    # v7x megacore balance: keep at least 2 grid steps so both TensorCores get work.
    while B * (n_pad // tile_n) < 2 and tile_n > 128:
        tile_n //= 2
    grid = (B, n_pad // tile_n)

    # NOTE: x2 / p2src / weights are grid-invariant within a batch; pl.Buffered(1) could
    # single-buffer them on v7x, left at the default double-buffering for compatibility.
    in_specs = [
        pl.BlockSpec((1, 3, tile_n), lambda b, n: (b, 0, n)),
        pl.BlockSpec((1, S, 3), lambda b, n: (b, 0, 0)),
        pl.BlockSpec((1, D1, tile_n), lambda b, n: (b, 0, n)),
        pl.BlockSpec((1, c_p2, S), lambda b, n: (b, 0, 0)),
    ]
    flat_params = [w0[:, :D1].astype(jnp.bfloat16)]           # layer-0, points1 half
    in_specs.append(pl.BlockSpec((c0, D1), lambda b, n: (0, 0)))
    if not reassoc_l0:
        flat_params.append(w0[:, D1:].astype(jnp.bfloat16))   # layer-0, interp half
        in_specs.append(pl.BlockSpec((c0, D2), lambda b, n: (0, 0)))
    flat_params.append(b0)
    in_specs.append(pl.BlockSpec((c0, 1), lambda b, n: (0, 0)))
    for (w_eff, b_eff) in folded[1:]:
        co, ci = w_eff.shape
        flat_params.append(w_eff.astype(jnp.bfloat16))
        in_specs.append(pl.BlockSpec((co, ci), lambda b, n: (0, 0)))
        flat_params.append(b_eff)
        in_specs.append(pl.BlockSpec((co, 1), lambda b, n: (0, 0)))

    # Advisory cost estimate so XLA schedules around the custom call sensibly.
    flops = (2 * n_pad * S * 3            # distance cross term
             + 2 * n_pad * S * c_p2       # interpolation matmul
             + 2 * n_pad * D1 * c0)       # layer-0 points1 half
    if not reassoc_l0:
        flops += 2 * n_pad * D2 * c0
    last_c = c0
    for p in params[1:]:
        co = p["w"].shape[0]
        flops += 2 * n_pad * last_c * co
        last_c = co
    bytes_accessed = int(
        x1.size * 4 + x2.size * 4 + p1.size * 2 + p2src.size * 2
        + sum(int(a.size) * a.dtype.itemsize for a in flat_params)
        + B * c_last * n_pad * jnp.dtype(out_dtype).itemsize)
    cost = pl.CostEstimate(flops=int(B * flops), transcendentals=int(B * n_pad * 4),
                           bytes_accessed=bytes_accessed)

    kernel = _make_fp_kernel(num_layers, S, reassoc_l0)
    out = pl.pallas_call(
        kernel,
        out_shape=jax.ShapeDtypeStruct((B, c_last, n_pad), out_dtype),
        grid=grid,
        in_specs=in_specs,
        out_specs=pl.BlockSpec((1, c_last, tile_n), lambda b, n: (b, 0, n)),
        compiler_params=pltpu.CompilerParams(
            dimension_semantics=("parallel", "parallel"),   # shard B x N-tiles over TCs
            vmem_limit_bytes=vmem_limit,
        ),
        cost_estimate=cost,
    )(x1, x2, p1, p2src, *flat_params)
    if n_pad != N:
        out = out[:, :, :N]
    return out


def _reference_fp(xyz1, xyz2, points1, points2, params):
    """Pure-JAX fp32 reference mirroring the PyTorch forward (S > 1, points1 given)."""
    x1 = jnp.transpose(xyz1, (0, 2, 1))
    x2 = jnp.transpose(xyz2, (0, 2, 1))
    p1 = jnp.transpose(points1, (0, 2, 1))
    p2 = jnp.transpose(points2, (0, 2, 1))
    B, N, _ = x1.shape
    dists = (jnp.sum(x1 ** 2, -1)[:, :, None] + jnp.sum(x2 ** 2, -1)[:, None, :]
             - 2.0 * jnp.einsum("bnc,bmc->bnm", x1, x2))
    idx = jnp.argsort(dists, axis=-1)[:, :, :3]
    d3 = jnp.take_along_axis(dists, idx, axis=-1)
    recip = 1.0 / (d3 + 1e-8)
    weight = recip / jnp.sum(recip, -1, keepdims=True)
    gathered = p2[jnp.arange(B)[:, None, None], idx]
    interp = jnp.sum(gathered * weight[..., None], axis=2)
    feat = jnp.concatenate([p1, interp], axis=-1)
    for p in params:
        y = jnp.einsum("bnc,oc->bno", feat, p["w"]) + p["b"][None, None, :]
        y = (y - p["mean"]) * jax.lax.rsqrt(p["var"] + BN_EPS)
        y = y * p["gamma"] + p["beta"]
        feat = jnp.maximum(y, 0.0)
    return jnp.transpose(feat, (0, 2, 1))


def _init_params(key, in_channel, mlp):
    params = []
    last = in_channel
    for c_out in mlp:
        key, kw, kb = jax.random.split(key, 3)
        params.append(dict(
            w=jax.random.normal(kw, (c_out, last), jnp.float32) * 0.1,
            b=jax.random.normal(kb, (c_out,), jnp.float32) * 0.01,
            gamma=jnp.ones((c_out,), jnp.float32),
            beta=jnp.zeros((c_out,), jnp.float32),
            mean=jnp.zeros((c_out,), jnp.float32),
            var=jnp.ones((c_out,), jnp.float32),
        ))
        last = c_out
    return params


def _run_case(key, B, N, S, D1, D2, mlp):
    k1, k2, k3, k4, kp = jax.random.split(key, 5)
    xyz1 = jax.random.normal(k1, (B, 3, N), jnp.float32)
    xyz2 = jax.random.normal(k2, (B, 3, S), jnp.float32)
    points1 = jax.random.normal(k3, (B, D1, N), jnp.float32)
    points2 = jax.random.normal(k4, (B, D2, S), jnp.float32)
    params = _init_params(kp, D1 + D2, mlp)

    out = pointnet_feature_propagation(xyz1, xyz2, points1, points2, params)
    out = jax.block_until_ready(out)

    ref = _reference_fp(xyz1, xyz2, points1, points2, params)
    assert out.shape == (B, mlp[-1], N), out.shape
    err = float(jnp.max(jnp.abs(out - ref)))
    # bf16 MXU matmuls + EUP approx reciprocals in the kernel => looser tolerance.
    assert jnp.allclose(out, ref, atol=5e-2, rtol=5e-2), err
    return err


if __name__ == "__main__":
    key = jax.random.PRNGKey(0)
    k_a, k_b = jax.random.split(key)
    # Non-reassociated layer-0 path (C0 >= D2): points2 shipped to the kernel.
    _run_case(k_a, B=2, N=16, S=8, D1=4, D2=6, mlp=[32, 16])
    # Reassociated path (C0 < D2): layer-0 projection of points2 hoisted to the host.
    _run_case(k_b, B=2, N=16, S=8, D1=4, D2=64, mlp=[32, 16])
    print("KERNEL_OK")
</pallas_src>

<mosaic_0001>
module attributes {stable_mosaic.version = 11 : i64} {
  func.func @kernel(%arg0: i32, %arg1: i32, %arg2: memref<1x3x128xf32, #tpu.memory_space<vmem>>, %arg3: memref<1x8x3xf32, #tpu.memory_space<vmem>>, %arg4: memref<1x4x128xbf16, #tpu.memory_space<vmem>>, %arg5: memref<1x6x8xbf16, #tpu.memory_space<vmem>>, %arg6: memref<32x4xbf16, #tpu.memory_space<vmem>>, %arg7: memref<32x6xbf16, #tpu.memory_space<vmem>>, %arg8: memref<32x1xf32, #tpu.memory_space<vmem>>, %arg9: memref<16x32xbf16, #tpu.memory_space<vmem>>, %arg10: memref<16x1xf32, #tpu.memory_space<vmem>>, %arg11: memref<1x16x128xf32, #tpu.memory_space<vmem>>) attributes {dimension_semantics = [#tpu.dimension_semantics<parallel>, #tpu.dimension_semantics<parallel>], iteration_bounds = array<i64: 2, 1>, scalar_prefetch = 0 : i64, scratch_operands = 0 : i64, tpu.core_type = #tpu.core_type<tc>, window_params = [{transform_indices = @transform_0, window_bounds = array<i64: 1, 3, 128>}, {transform_indices = @transform_1, window_bounds = array<i64: 1, 8, 3>}, {transform_indices = @transform_2, window_bounds = array<i64: 1, 4, 128>}, {transform_indices = @transform_3, window_bounds = array<i64: 1, 6, 8>}, {pipeline_mode = #tpu.pipeline_mode<synchronous>, transform_indices = @transform_4, window_bounds = array<i64: 32, 4>}, {pipeline_mode = #tpu.pipeline_mode<synchronous>, transform_indices = @transform_5, window_bounds = array<i64: 32, 6>}, {pipeline_mode = #tpu.pipeline_mode<synchronous>, transform_indices = @transform_6, window_bounds = array<i64: 32, 1>}, {pipeline_mode = #tpu.pipeline_mode<synchronous>, transform_indices = @transform_7, window_bounds = array<i64: 16, 32>}, {pipeline_mode = #tpu.pipeline_mode<synchronous>, transform_indices = @transform_8, window_bounds = array<i64: 16, 1>}, {transform_indices = @transform_9, window_bounds = array<i64: 1, 16, 128>}]} {
    %c0 = arith.constant 0 : index
    %c0_0 = arith.constant 0 : index
    %c0_1 = arith.constant 0 : index
    %0 = vector.load %arg2[%c0, %c0_0, %c0_1] : memref<1x3x128xf32, #tpu.memory_space<vmem>>, vector<1x3x128xf32>
    %1 = vector.shape_cast %0 : vector<1x3x128xf32> to vector<3x128xf32>
    %c0_2 = arith.constant 0 : index
    %c0_3 = arith.constant 0 : index
    %c0_4 = arith.constant 0 : index
    %2 = vector.load %arg3[%c0_2, %c0_3, %c0_4] : memref<1x8x3xf32, #tpu.memory_space<vmem>>, vector<1x8x3xf32>
    %3 = vector.shape_cast %2 : vector<1x8x3xf32> to vector<8x3xf32>
    %c0_5 = arith.constant 0 : index
    %c0_6 = arith.constant 0 : index
    %c0_7 = arith.constant 0 : index
    %4 = vector.load %arg4[%c0_5, %c0_6, %c0_7] : memref<1x4x128xbf16, #tpu.memory_space<vmem>>, vector<1x4x128xbf16>
    %5 = vector.shape_cast %4 : vector<1x4x128xbf16> to vector<4x128xbf16>
    %c0_8 = arith.constant 0 : index
    %c0_9 = arith.constant 0 : index
    %c0_10 = arith.constant 0 : index
    %6 = vector.load %arg5[%c0_8, %c0_9, %c0_10] : memref<1x6x8xbf16, #tpu.memory_space<vmem>>, vector<1x6x8xbf16>
    %7 = vector.shape_cast %6 : vector<1x6x8xbf16> to vector<6x8xbf16>
    %8 = vector.extract_strided_slice %1 {offsets = [0, 0], sizes = [1, 128], strides = [1, 1]} : vector<3x128xf32> to vector<1x128xf32>
    %9 = vector.extract_strided_slice %1 {offsets = [0, 0], sizes = [1, 128], strides = [1, 1]} : vector<3x128xf32> to vector<1x128xf32>
    %10 = arith.mulf %8, %9 : vector<1x128xf32>
    %11 = vector.extract_strided_slice %1 {offsets = [1, 0], sizes = [1, 128], strides = [1, 1]} : vector<3x128xf32> to vector<1x128xf32>
    %12 = vector.extract_strided_slice %1 {offsets = [1, 0], sizes = [1, 128], strides = [1, 1]} : vector<3x128xf32> to vector<1x128xf32>
    %13 = arith.mulf %11, %12 : vector<1x128xf32>
    %14 = arith.addf %10, %13 : vector<1x128xf32>
    %15 = vector.extract_strided_slice %1 {offsets = [2, 0], sizes = [1, 128], strides = [1, 1]} : vector<3x128xf32> to vector<1x128xf32>
    %16 = vector.extract_strided_slice %1 {offsets = [2, 0], sizes = [1, 128], strides = [1, 1]} : vector<3x128xf32> to vector<1x128xf32>
    %17 = arith.mulf %15, %16 : vector<1x128xf32>
    %18 = arith.addf %14, %17 : vector<1x128xf32>
    %19 = arith.mulf %3, %3 : vector<8x3xf32>
    %cst = arith.constant dense<0.000000e+00> : vector<8xf32>
    %20 = vector.multi_reduction <add>, %19, %cst [1] : vector<8x3xf32> to vector<8xf32>
    %21 = vector.shape_cast %20 : vector<8xf32> to vector<8x1xf32>
    %cst_11 = arith.constant dense<0.000000e+00> : vector<8x128xf32>
    %22 = tpu.matmul %3, %1, %cst_11 {dimension_numbers = #tpu.dot_dimension_numbers<[1], [0], [0], [1], [0, 0, 1, 1], [], []>} : vector<8x3xf32>, vector<3x128xf32>, vector<8x128xf32> -> vector<8x128xf32>
    %23 = vector.broadcast %21 : vector<8x1xf32> to vector<8x128xf32>
    %24 = vector.broadcast %18 : vector<1x128xf32> to vector<8x128xf32>
    %25 = arith.addf %23, %24 : vector<8x128xf32>
    %cst_12 = arith.constant 2.000000e+00 : f32
    %26 = vector.broadcast %cst_12 : f32 to vector<8x128xf32>
    %27 = arith.mulf %26, %22 : vector<8x128xf32>
    %28 = arith.subf %25, %27 : vector<8x128xf32>
    %cst_13 = arith.constant 9.99999996E-13 : f32
    %29 = vector.broadcast %cst_13 : f32 to vector<8x128xf32>
    %30 = arith.maximumf %28, %29 : vector<8x128xf32>
    %31 = tpu.iota {dimensions = array<i32: 0>} : vector<8x128xi32>
    %cst_14 = arith.constant 0.000000e+00 : f32
    %32 = vector.broadcast %cst_14 : f32 to vector<8x128xf32>
    %cst_15 = arith.constant 0.000000e+00 : f32
    %33 = vector.broadcast %cst_15 : f32 to vector<1x128xf32>
    %34 = tpu.bitcast %30 : vector<8x128xf32> -> vector<8x128xi32>
    %c-8_i32 = arith.constant -8 : i32
    %35 = vector.broadcast %c-8_i32 : i32 to vector<8x128xi32>
    %36 = arith.andi %34, %35 : vector<8x128xi32>
    %37 = arith.ori %36, %31 : vector<8x128xi32>
    %38 = tpu.bitcast %37 : vector<8x128xi32> -> vector<8x128xf32>
    %cst_16 = arith.constant dense<0x7F800000> : vector<128xf32>
    %39 = vector.multi_reduction <minimumf>, %38, %cst_16 [0] : vector<8x128xf32> to vector<128xf32>
    %40 = vector.shape_cast %39 : vector<128xf32> to vector<1x128xf32>
    %41 = tpu.bitcast %40 : vector<1x128xf32> -> vector<1x128xi32>
    %c7_i32 = arith.constant 7 : i32
    %42 = vector.broadcast %c7_i32 : i32 to vector<1x128xi32>
    %43 = arith.andi %41, %42 : vector<1x128xi32>
    %44 = vector.broadcast %43 : vector<1x128xi32> to vector<8x128xi32>
    %45 = arith.cmpi eq, %31, %44 : vector<8x128xi32>
    %46 = arith.subi %41, %43 : vector<1x128xi32>
    %47 = tpu.bitcast %46 : vector<1x128xi32> -> vector<1x128xf32>
    %cst_17 = arith.constant 0x7F800000 : f32
    %48 = vector.broadcast %cst_17 : f32 to vector<8x128xf32>
    %49 = arith.select %45, %48, %38 : vector<8x128xi1>, vector<8x128xf32>
    %cst_18 = arith.constant 9.99999993E-9 : f32
    %50 = vector.broadcast %cst_18 : f32 to vector<1x128xf32>
    %51 = arith.addf %47, %50 : vector<1x128xf32>
    %52 = tpu.reciprocal %51 {approx = true} : vector<1x128xf32> -> vector<1x128xf32>
    %53 = vector.shape_cast %52 : vector<1x128xf32> to vector<1x128xf32>
    %54 = vector.broadcast %53 : vector<1x128xf32> to vector<8x128xf32>
    %55 = arith.select %45, %54, %32 : vector<8x128xi1>, vector<8x128xf32>
    %56 = arith.addf %33, %52 : vector<1x128xf32>
    %cst_19 = arith.constant dense<0x7F800000> : vector<128xf32>
    %57 = vector.multi_reduction <minimumf>, %49, %cst_19 [0] : vector<8x128xf32> to vector<128xf32>
    %58 = vector.shape_cast %57 : vector<128xf32> to vector<1x128xf32>
    %59 = tpu.bitcast %58 : vector<1x128xf32> -> vector<1x128xi32>
    %c7_i32_20 = arith.constant 7 : i32
    %60 = vector.broadcast %c7_i32_20 : i32 to vector<1x128xi32>
    %61 = arith.andi %59, %60 : vector<1x128xi32>
    %62 = vector.broadcast %61 : vector<1x128xi32> to vector<8x128xi32>
    %63 = arith.cmpi eq, %31, %62 : vector<8x128xi32>
    %64 = arith.subi %59, %61 : vector<1x128xi32>
    %65 = tpu.bitcast %64 : vector<1x128xi32> -> vector<1x128xf32>
    %cst_21 = arith.constant 0x7F800000 : f32
    %66 = vector.broadcast %cst_21 : f32 to vector<8x128xf32>
    %67 = arith.select %63, %66, %49 : vector<8x128xi1>, vector<8x128xf32>
    %cst_22 = arith.constant 9.99999993E-9 : f32
    %68 = vector.broadcast %cst_22 : f32 to vector<1x128xf32>
    %69 = arith.addf %65, %68 : vector<1x128xf32>
    %70 = tpu.reciprocal %69 {approx = true} : vector<1x128xf32> -> vector<1x128xf32>
    %71 = vector.shape_cast %70 : vector<1x128xf32> to vector<1x128xf32>
    %72 = vector.broadcast %71 : vector<1x128xf32> to vector<8x128xf32>
    %73 = arith.select %63, %72, %55 : vector<8x128xi1>, vector<8x128xf32>
    %74 = arith.addf %56, %70 : vector<1x128xf32>
    %cst_23 = arith.constant dense<0x7F800000> : vector<128xf32>
    %75 = vector.multi_reduction <minimumf>, %67, %cst_23 [0] : vector<8x128xf32> to vector<128xf32>
    %76 = vector.shape_cast %75 : vector<128xf32> to vector<1x128xf32>
    %77 = tpu.bitcast %76 : vector<1x128xf32> -> vector<1x128xi32>
    %c7_i32_24 = arith.constant 7 : i32
    %78 = vector.broadcast %c7_i32_24 : i32 to vector<1x128xi32>
    %79 = arith.andi %77, %78 : vector<1x128xi32>
    %80 = vector.broadcast %79 : vector<1x128xi32> to vector<8x128xi32>
    %81 = arith.cmpi eq, %31, %80 : vector<8x128xi32>
    %82 = arith.subi %77, %79 : vector<1x128xi32>
    %83 = tpu.bitcast %82 : vector<1x128xi32> -> vector<1x128xf32>
    %cst_25 = arith.constant 9.99999993E-9 : f32
    %84 = vector.broadcast %cst_25 : f32 to vector<1x128xf32>
    %85 = arith.addf %83, %84 : vector<1x128xf32>
    %86 = tpu.reciprocal %85 {approx = true} : vector<1x128xf32> -> vector<1x128xf32>
    %87 = vector.shape_cast %86 : vector<1x128xf32> to vector<1x128xf32>
    %88 = vector.broadcast %87 : vector<1x128xf32> to vector<8x128xf32>
    %89 = arith.select %81, %88, %73 : vector<8x128xi1>, vector<8x128xf32>
    %90 = arith.addf %74, %86 : vector<1x128xf32>
    %91 = arith.truncf %89 : vector<8x128xf32> to vector<8x128xbf16>
    %c0_26 = arith.constant 0 : index
    %c0_27 = arith.constant 0 : index
    %92 = vector.load %arg6[%c0_26, %c0_27] : memref<32x4xbf16, #tpu.memory_space<vmem>>, vector<32x4xbf16>
    %cst_28 = arith.constant dense<0.000000e+00> : vector<32x128xf32>
    %93 = tpu.matmul %92, %5, %cst_28 {dimension_numbers = #tpu.dot_dimension_numbers<[1], [0], [0], [1], [0, 0, 1, 1], [], []>} : vector<32x4xbf16>, vector<4x128xbf16>, vector<32x128xf32> -> vector<32x128xf32>
    %cst_29 = arith.constant dense<0.000000e+00> : vector<6x128xf32>
    %94 = tpu.matmul %7, %91, %cst_29 {dimension_numbers = #tpu.dot_dimension_numbers<[1], [0], [0], [1], [0, 0, 1, 1], [], []>} : vector<6x8xbf16>, vector<8x128xbf16>, vector<6x128xf32> -> vector<6x128xf32>
    %95 = tpu.reciprocal %90 {approx = true} : vector<1x128xf32> -> vector<1x128xf32>
    %c0_30 = arith.constant 0 : index
    %c0_31 = arith.constant 0 : index
    %96 = vector.load %arg7[%c0_30, %c0_31] : memref<32x6xbf16, #tpu.memory_space<vmem>>, vector<32x6xbf16>
    %97 = vector.broadcast %95 : vector<1x128xf32> to vector<6x128xf32>
    %98 = arith.mulf %94, %97 : vector<6x128xf32>
    %99 = arith.truncf %98 : vector<6x128xf32> to vector<6x128xbf16>
    %cst_32 = arith.constant dense<0.000000e+00> : vector<32x128xf32>
    %100 = tpu.matmul %96, %99, %cst_32 {dimension_numbers = #tpu.dot_dimension_numbers<[1], [0], [0], [1], [0, 0, 1, 1], [], []>} : vector<32x6xbf16>, vector<6x128xbf16>, vector<32x128xf32> -> vector<32x128xf32>
    %101 = arith.addf %93, %100 : vector<32x128xf32>
    %c0_33 = arith.constant 0 : index
    %c0_34 = arith.constant 0 : index
    %102 = vector.load %arg8[%c0_33, %c0_34] : memref<32x1xf32, #tpu.memory_space<vmem>>, vector<32x1xf32>
    %103 = vector.broadcast %102 : vector<32x1xf32> to vector<32x128xf32>
    %104 = arith.addf %101, %103 : vector<32x128xf32>
    %cst_35 = arith.constant 0.000000e+00 : f32
    %105 = vector.broadcast %cst_35 : f32 to vector<32x128xf32>
    %106 = arith.maximumf %104, %105 : vector<32x128xf32>
    %c0_36 = arith.constant 0 : index
    %c0_37 = arith.constant 0 : index
    %107 = vector.load %arg9[%c0_36, %c0_37] : memref<16x32xbf16, #tpu.memory_space<vmem>>, vector<16x32xbf16>
    %108 = arith.truncf %106 : vector<32x128xf32> to vector<32x128xbf16>
    %cst_38 = arith.constant dense<0.000000e+00> : vector<16x128xf32>
    %109 = tpu.matmul %107, %108, %cst_38 {dimension_numbers = #tpu.dot_dimension_numbers<[1], [0], [0], [1], [0, 0, 1, 1], [], []>} : vector<16x32xbf16>, vector<32x128xbf16>, vector<16x128xf32> -> vector<16x128xf32>
    %c0_39 = arith.constant 0 : index
    %c0_40 = arith.constant 0 : index
    %110 = vector.load %arg10[%c0_39, %c0_40] : memref<16x1xf32, #tpu.memory_space<vmem>>, vector<16x1xf32>
    %111 = vector.broadcast %110 : vector<16x1xf32> to vector<16x128xf32>
    %112 = arith.addf %109, %111 : vector<16x128xf32>
    %cst_41 = arith.constant 0.000000e+00 : f32
    %113 = vector.broadcast %cst_41 : f32 to vector<16x128xf32>
    %114 = arith.maximumf %112, %113 : vector<16x128xf32>
    %c0_42 = arith.constant 0 : index
    %c0_43 = arith.constant 0 : index
    %c0_44 = arith.constant 0 : index
    %115 = vector.load %arg11[%c0_42, %c0_43, %c0_44] : memref<1x16x128xf32, #tpu.memory_space<vmem>>, vector<1x16x128xf32>
    %116 = vector.shape_cast %115 : vector<1x16x128xf32> to vector<16x128xf32>
    %117 = vector.shape_cast %114 : vector<16x128xf32> to vector<1x16x128xf32>
    tpu.vector_store %arg11[%c0_42, %c0_43, %c0_44], %117 {strides = array<i32>} : memref<1x16x128xf32, #tpu.memory_space<vmem>>, vector<1x16x128xf32>,
    return
  }
  func.func @transform_0(%arg0: i32, %arg1: i32) -> (i32, i32, i32) {
    %c0_i32 = arith.constant 0 : i32
    %c0_i32_0 = arith.constant 0 : i32
    return %arg0, %c0_i32, %arg1 : i32, i32, i32
  }
  func.func @transform_1(%arg0: i32, %arg1: i32) -> (i32, i32, i32) {
    %c0_i32 = arith.constant 0 : i32
    %c0_i32_0 = arith.constant 0 : i32
    %c0_i32_1 = arith.constant 0 : i32
    return %arg0, %c0_i32, %c0_i32_0 : i32, i32, i32
  }
  func.func @transform_2(%arg0: i32, %arg1: i32) -> (i32, i32, i32) {
    %c0_i32 = arith.constant 0 : i32
    %c0_i32_0 = arith.constant 0 : i32
    return %arg0, %c0_i32, %arg1 : i32, i32, i32
  }
  func.func @transform_3(%arg0: i32, %arg1: i32) -> (i32, i32, i32) {
    %c0_i32 = arith.constant 0 : i32
    %c0_i32_0 = arith.constant 0 : i32
    %c0_i32_1 = arith.constant 0 : i32
    return %arg0, %c0_i32, %c0_i32_0 : i32, i32, i32
  }
  func.func @transform_4(%arg0: i32, %arg1: i32) -> (i32, i32) {
    %c0_i32 = arith.constant 0 : i32
    %c0_i32_0 = arith.constant 0 : i32
    %c0_i32_1 = arith.constant 0 : i32
    return %c0_i32, %c0_i32_0 : i32, i32
  }
  func.func @transform_5(%arg0: i32, %arg1: i32) -> (i32, i32) {
    %c0_i32 = arith.constant 0 : i32
    %c0_i32_0 = arith.constant 0 : i32
    %c0_i32_1 = arith.constant 0 : i32
    return %c0_i32, %c0_i32_0 : i32, i32
  }
  func.func @transform_6(%arg0: i32, %arg1: i32) -> (i32, i32) {
    %c0_i32 = arith.constant 0 : i32
    %c0_i32_0 = arith.constant 0 : i32
    %c0_i32_1 = arith.constant 0 : i32
    return %c0_i32, %c0_i32_0 : i32, i32
  }
  func.func @transform_7(%arg0: i32, %arg1: i32) -> (i32, i32) {
    %c0_i32 = arith.constant 0 : i32
    %c0_i32_0 = arith.constant 0 : i32
    %c0_i32_1 = arith.constant 0 : i32
    return %c0_i32, %c0_i32_0 : i32, i32
  }
  func.func @transform_8(%arg0: i32, %arg1: i32) -> (i32, i32) {
    %c0_i32 = arith.constant 0 : i32
    %c0_i32_0 = arith.constant 0 : i32
    %c0_i32_1 = arith.constant 0 : i32
    return %c0_i32, %c0_i32_0 : i32, i32
  }
  func.func @transform_9(%arg0: i32, %arg1: i32) -> (i32, i32, i32) {
    %c0_i32 = arith.constant 0 : i32
    %c0_i32_0 = arith.constant 0 : i32
    return %arg0, %c0_i32, %arg1 : i32, i32, i32
  }
}

</mosaic_0001>

<bundles_post_ra>
// kernel: tpu_custom_call.1
= control target key start
LH: loop header
LB: loop body
LE: loop exit
PB: predicated region body
PF: predicated region fallthrough
CT: control target
= control target key end

     0   :  { %14 = vsyncpa [#allocation3], 0  ;;  %s1488_s0 = inlined_call_operand.vmem [shape: f32[2,3,128], index: 0, kind: input, shape index: {}]   ;;  %s1489_s1 = inlined_call_operand.vmem [shape: f32[2,8,3], index: 1, kind: input, shape index: {}]   ;;  %s1490_s2 = inlined_call_operand.vmem [shape: bf16[2,4,128], index: 2, kind: input, shape index: {}]   ;;  %s1491_s3 = inlined_call_operand.vmem [shape: bf16[2,6,8], index: 3, kind: input, shape index: {}]   ;;  %s1492_s4 = inlined_call_operand.vmem [shape: bf16[32,4], index: 4, kind: input, shape index: {}]   ;;  %s1493_s5 = inlined_call_operand.vmem [shape: bf16[32,6], index: 5, kind: input, shape index: {}]   ;;  %s1494_s6 = inlined_call_operand.vmem [shape: f32[32,1], index: 6, kind: input, shape index: {}]   ;;  %s1495_s7 = inlined_call_operand.vmem [shape: bf16[16,32], index: 7, kind: input, shape index: {}]   ;;  %s1496_s8 = inlined_call_operand.vmem [shape: f32[16,1], index: 8, kind: input, shape index: {}]   ;;  %s1497_s9 = inlined_call_operand.hbm [shape: f32[2,16,128], index: 9, kind: output, shape index: {}]  }
   0x1   :  { %16 = vsyncpa [#allocation3 + $0x1], 0  ;;  %s1291_s30 = smov 0   ;;  %s1293_s10 = smov 0  }
   0x2   :  { %s1295_s11 = smov 0   ;;  %s1297_s12 = smov 0  }
   0x3   :  { %s1299_s13 = smov 0   ;;  %s1301_s14 = smov 0  }
   0x4 LB: > { %s1001_s15 = sadd.s32 4294967295, %s1233_s14   ;;  %s1002_s16 = sadd.s32 4294967294, %s1233_s14   ;;  %s1233_s14 = sphi %s1301_s14, %s22_s14   ;;  %s1229_s13 = sphi %s1299_s13, %s1508_s13   ;;  %s1225_s12 = sphi %s1297_s12, %s1507_s12   ;;  %s1221_s11 = sphi %s1295_s11, %s1506_s11   ;;  %s1217_s10 = sphi %s1293_s10, %s1505_s10   ;;  %s1213_s30 = sphi %s1291_s30, %s1504_s30  }
   0x5   : > { %s34_s17 = sadd.s32 1, %s1229_s13  ;;  %s256_s18 = sadd.s32 1, %s1221_s11 }
   0x6   : > { %p36_p0 = scmp.ge.s32.totalorder %s34_s17, 2  ;;  %p266_p1 = scmp.ne.s32.totalorder %s1221_s11, %s1217_s10 }
   0x7   : > { %p267_p2 = scmp.eq.s32.totalorder %s1001_s15, 1  ;;  %p272_p3 = scmp.ne.s32.totalorder %s1217_s10, %s1213_s30 }
   0x8   : > { %s1510_s17 = smov (%p36_p0, %s34_s17), 0  ;;  %p273_p5 = scmp.eq.s32.totalorder %s1002_s16, 1 }
   0x9   : > { %p1331_p4 = por %p267_p2, %p266_p1  ;;  %s251_s20 = ssub.s32 %s1229_s13, %s1510_s17 }
   0xa   : > { %p1005_p6 = scmp.ge.s32.totalorder %s1233_s14, 1  ;;  %p254_p7 = scmp.eq.s32.totalorder %s251_s20, 0 }
   0xb   : > { %p1338_p8 = por %p273_p5, %p272_p3  ;;  %p340_p9 = scmp.lt.s32.totalorder %s1233_s14, 3 }
   0xc   : > { %s1344_s22 = scalar_select %p254_p7, %s1221_s11, %s256_s18  }
   0xd   : > { %p341_p10 = pnand %p1005_p6, %p340_p9 }
   0xe   : > { %p393_p11 = scmp.lt.s32.totalorder (!%p341_p10), %s1225_s12, 1  ;;  %v1235_v0 = vmov (!%p341_p10), 0.0   ;;  %vm1236_vm0 = vmmov (!%p341_p10), 0   ;;  %vm436_vm1 = vcmask (!%p341_p10), 1042432   ;;  %vm429_vm2 = vcmask (!%p341_p10), 23552   ;;  %v1146_v41 = vld [vmem:[%s1495_s7] sm:$0xff] (!%p341_p10)  }
   0xf   : > { %344 = sbr.rel (%p341_p10) target bundleno = 1011 (0x3f3), region = 56  ;;  %1043 = vmatprep.subr.mxu0 (!%p341_p10), %v1235_v0  ;;  %1045 = vmatprep.mubr.msk.f32.mxu0 (!%p341_p10), %vm1236_vm0, %v1235_v0  ;;  %v510_v7 = vlaneseq (!%p341_p10)  ;;  %vm580_vm6 = vcmask (!%p341_p10), 1043456   ;;  %vm576_vm7 = vcmask (!%p341_p10), 64512   ;;  %vm641_vm8 = vcmask (!%p341_p10), 48128   ;;  %s390_s15 = sand.u32 (!%p341_p10), 1, %s1217_s10  }
  0x10   : > { %1048 = vmatprep.subr.bf16.mxu1 (!%p341_p10), %v1235_v0  ;;  %1050 = vmatprep.mubr.msk.bf16.mxu1 (!%p341_p10), %vm1236_vm0, %v1235_v0  ;;  %vm717_vm9 = vcmask (!%p341_p10), 1041408   ;;  %vm710_vm10 = vcmask (!%p341_p10), 31744   ;;  %vm823_vm11 = vcmask (!%p341_p10), 261120   ;;  %s1238_s29 = smov (!%p341_p10), [#allocation2]  }
  0x11   : > { %v511_v8 = vshrl.u32 (!%p341_p10), %v510_v7, 7  ;;  %v773_v7 = vld [vmem:[%s1494_s6 + $0x18] sm:$0xff] (!%p341_p10) }
  0x13   : > { %v512_v11 = vsub.s32 (!%p341_p10), 0, %v511_v8 }
  0x16   : > { %s1351_s23 = scalar_select %p393_p11, %s1225_s12, 1 }
  0x18   : > { %s1007_s24 = sshll.u32 %s1351_s23, 2  ;;  %s1008_s25 = sshll.u32 %s1351_s23, 3 }
  0x19   : > { %s399_s28 = scalar_lea.vmem %s1488_s0, %s1007_s24  ;;  %s403_s16 = scalar_lea.vmem %s1489_s1, %s1008_s25 }
  0x1a   : > { %v416_v1 = vld [vmem:[%s399_s28] sm:$0x7]  ;;  %s414_s25 = scalar_lea.vmem %s1491_s3, %s1007_s24  ;;  %s1009_s24 = sshll.u32 %s1351_s23, 1 }
  0x1b   : > { %v417_v2 = vld [vmem:[%s403_s16] sm:$0xff]  ;;  %1044 = vmatpush3.msk.msra.mxu0 %vm436_vm1, %v416_v1  ;;  %v420_v5 = vmul.f32 %v416_v1, %v416_v1  ;;  %s410_s18 = scalar_lea.vmem %s1490_s2, %s1009_s24  ;;  %s1006_s16 = sshll.u32 %s390_s15, 4 }
  0x1c   : > { %v428_v3 = vmul.f32 %v417_v2, %v417_v2  ;;  %1046 = vmatmul.mubr.msk.f32.vlgmr.msra.gmra.mrb[0].mxu0 %vm429_vm2, %v417_v2  ;;  %v419_v1 = vld [vmem:[%s414_s25] sm:$0x7]  ;;  %s1029_s25 = sshll.u32 %s1225_s12, 8  ;;  %s1442_s28 = scalar_lea.sflag [#allocation3], %s390_s15 }
  0x1d   : > { %v422_v6 = vrot.slane %v420_v5, 1  ;;  %v425_v10 = vrot.slane %v420_v5, 2  ;;  %v1142_v2 = vld [vmem:[%s1493_s5] sm:$0xff]   ;;  %s1440_s27 = scalar_lea.hbm %s1497_s9, %s1029_s25  ;;  %s1159_s24 = sshll.u32 %s1238_s29, 4  ;;  %s1160_s24 = int_to_ptr.vmem [resolvable:$false] %s1159_s24 }
  0x1e   : > { %v430_v4 = vsel %vm429_vm2, %v428_v3, 0.0  ;;  %1056 = vmatprep.mubr.msk.bf16.mxu0 %vm641_vm8, %v1142_v2  ;;  %v771_v3 = vld [vmem:[%s1494_s6 + $0x8] sm:$0xff] }
  0x1f   : > { %431 = vadd.xlane.f32.xlu0 %v430_v4  ;;  %v424_v9 = vadd.f32 %v422_v6, %v420_v5  ;;  %v1237_v4 = vmov 0   ;;  %v770_v5 = vld [vmem:[%s1494_s6] sm:$0xff]  ;;  %v772_v6 = vld [vmem:[%s1494_s6 + $0x10] sm:$0xff] }
  0x20   : > { %1141 = vset.pattern.permute.xlu1 %v1237_v4  ;;  %1140 = vset.pattern.permute.xlu0 %v1237_v4 }
  0x21   : > { %v427_v12 = vadd.f32 %v425_v10, %v424_v9  ;;  %781 = vperm.xlu1 %1141, %v771_v3   ;;  %v807_v9 = vld [vmem:[%s1496_s8 + $0x8] sm:$0xff] }
  0x23   : > { %v513_v13 = vrot.slane %v427_v12, %v512_v11 }
  0x25   : > { %786 = vperm.xlu1 %1141, %v772_v6  }
  0x29   : > { %791 = vperm.xlu1 %1141, %v773_v7  }
  0x35   : > { %776 = vperm.xlu0 %1140, %v770_v5  }
  0xac   : > { %v432_v14 = vpop.xlane.xlu0 %431 }
  0xad   : > { %v514_v15 = vadd.f32 %v513_v13, %v432_v14 }
  0xef   : > { %v506_v16 = vpop.f32.mrb[0].mxu0 }
  0xf0   : > { %v515_v17 = vmul.f32 2.0, %v506_v16  ;;  %v1047_v18 = vpop.f32.mrb[1].mxu0 }
  0xf2   : > { %v516_v19 = vsub.f32 %v514_v15, %v515_v17  ;;  %v418_v17 = vld [vmem:[%s410_s18] sm:$0x3]  ;;  %s392_s18 = scalar_lea.vmem [#allocation2], %s1006_s16  ;;  %s1161_s16 = scalar_lea.vmem %s1160_s24, 512 }
  0xf3   : > { %s887_s20 = sshll.u32 %s392_s18, 4  ;;  %s1435_s20 = int_to_ptr.vmem [resolvable:$true] %s887_s20 }
  0xf4   : > { %v517_v20 = vmax.f32 %v516_v19, 1e-12  ;;  %v1143_v19 = vld [vmem:[%s1493_s5 + $0x8] sm:$0xff]   ;;  %s1155_s12 = scalar_lea.vmem %s1435_s20, 256  ;;  %p1162_p1 = scmp.lt.s32.totalorder %s1435_s20, %s1160_s24 }
  0xf5   : > { %p1156_p12 = scmp.ne.s32.totalorder %s1435_s20, %s1155_s12  ;;  %p1163_p2 = scmp.lt.s32.totalorder %s1161_s16, %s1155_s12 }
  0xf6   : > { %v521_v21 = vand.u32 4294967288, %v517_v20  ;;  %v1144_v20 = vld [vmem:[%s1492_s4] sm:$0xff]  }
  0xf7   : > { %p1157_p13 = pnand %p1156_p12, %p1331_p4  ;;  %p1164_p3 = por %p1163_p2, %p1162_p1 }
  0xf8   : > { %v522_v22 = vor.u32 %v521_v21, %v511_v8  ;;  %v719_v21 = vsel %vm717_vm9, %v418_v17, 0 }
  0xf9   : > { %p1158_p0 = pneg %p1157_p13 }
  0xfa   : > { %v524_v23 = vrot.slane %v522_v22, 4 }
  0xfb   : > { %p1165_p5 = pnand %p1164_p3, %p1158_p0 }
  0xfc   : > { %v525_v24 = vmin.f32 %v522_v22, %v524_v23  ;;  %v782_v23 = vpop.permute.xlu1 %781 }
  0xfe   : > { %v526_v25 = vrot.slane %v525_v24, 2 }
 0x100   : > { %v527_v26 = vmin.f32 %v525_v24, %v526_v25  ;;  %v787_v24 = vpop.permute.xlu1 %786  ;;  %v777_v25 = vpop.permute.xlu0 %776 }
 0x102   : > { %v528_v27 = vrot.slane %v527_v26, 1 }
 0x104   : > { %v529_v28 = vmin.f32 %v527_v26, %v528_v27 }
 0x106   : > { %v531_v29 = vand.u32 7, %v529_v28 }
 0x108   : > { %vm1367_vm3 = vcmp.eq.s32.totalorder %v511_v8, %v531_v29  ;;  %v533_v37 = vsub.s32 %v529_v28, %v531_v29  ;;  %v792_v29 = vpop.permute.xlu1 %791 }
 0x109   : > { %v535_v31 = vsel %vm1367_vm3, inf, %v522_v22  ;;  %v1145_v22 = vld [vmem:[%s1492_s4 + $0x8] sm:$0xff]  }
 0x10a   : > { %v540_v32 = vrot.slane %v535_v31, 4  ;;  %v536_v40 = vadd.f32 1e-08, %v533_v37 }
 0x10c   : > { %v541_v33 = vmin.f32 %v535_v31, %v540_v32  ;;  %1147 = vrcp.f32 %v536_v40 }
 0x10e   : > { %v542_v34 = vrot.slane %v541_v33, 2 }
 0x110   : > { %v543_v35 = vmin.f32 %v541_v33, %v542_v34 }
 0x112   : > { %v544_v36 = vrot.slane %v543_v35, 1 }
 0x114   : > { %v545_v38 = vmin.f32 %v543_v35, %v544_v36 }
 0x116   : > { %v547_v39 = vand.u32 7, %v545_v38  ;;  %v1148_v51 = vpop.eup %1147 }
 0x117   : > { %v538_v57 = vsel %vm1367_vm3, %v1148_v51, 0.0 }
 0x118   : > { %vm1373_vm4 = vcmp.eq.s32.totalorder %v511_v8, %v547_v39  ;;  %v549_v42 = vsub.s32 %v545_v38, %v547_v39 }
 0x119   : > { %v551_v43 = vsel %vm1373_vm4, inf, %v535_v31 }
 0x11a   : > { %v552_v44 = vadd.f32 1e-08, %v549_v42  ;;  %v556_v45 = vrot.slane %v551_v43, 4 }
 0x11c   : > { %1149 = vrcp.f32 %v552_v44  ;;  %v557_v46 = vmin.f32 %v551_v43, %v556_v45 }
 0x11e   : > { %v558_v47 = vrot.slane %v557_v46, 2 }
 0x120   : > { %v559_v48 = vmin.f32 %v557_v46, %v558_v47 }
 0x122   : > { %v560_v49 = vrot.slane %v559_v48, 1 }
 0x124   : > { %v561_v50 = vmin.f32 %v559_v48, %v560_v49 }
 0x126   : > { %v1150_v52 = vpop.eup %1149  ;;  %v563_v53 = vand.u32 7, %v561_v50 }
 0x127   : > { %v555_v54 = vadd.f32 %v1150_v52, %v1148_v51  ;;  %v554_v59 = vsel %vm1373_vm4, %v1150_v52, %v538_v57 }
 0x128   : > { %v565_v55 = vsub.s32 %v561_v50, %v563_v53  ;;  %vm564_vm5 = vcmp.eq.s32.totalorder %v511_v8, %v563_v53  ;;  %v806_v8 = vld [vmem:[%s1496_s8] sm:$0xff] }
 0x129   : > { %810 = vperm.xlu1 %1141, %v806_v8  }
 0x12a   : > { %v567_v56 = vadd.f32 1e-08, %v565_v55 }
 0x12c   : > { %1151 = vrcp.f32 %v567_v56 }
 0x12d   : > { %815 = vperm.xlu1 %1141, %v807_v9  }
 0x136   : > { %v1152_v58 = vpop.eup %1151 }
 0x137   : > { %v569_v60 = vsel %vm564_vm5, %v1152_v58, %v554_v59  ;;  %v570_v61 = vadd.f32 %v1152_v58, %v555_v54 }
 0x138   : > { %v571_v62 = vpack.c.bf16 %v569_v60, %v569_v60 }
 0x139   : > { %1153 = vrcp.f32 %v570_v61 }
 0x13a   : > { %v582_v63 = vsel %vm580_vm6, %v571_v62, 0 }
 0x13b   : > { %1049 = vmatpush3.bf16.msra.mxu1 %v582_v63 }
 0x13c   : > { %1066 = vmatprep.subr.bf16.mxu1 %v1235_v0 }
 0x13e   : > { %1051 = vmatmul.mubr.msk.bf16.vlgmr.msra.gmra.mrb[0].mxu1 %vm576_vm7, %v419_v1 }
 0x13f   : > { %1070 = vmatprep.mubr.msk.bf16.mxu1 %vm1236_vm0, %v1235_v0 }
 0x143   : > { %v1154_v10 = vpop.eup %1153 }
 0x1a8   : > { %v811_v42 = vpop.permute.xlu1 %810 }
 0x1ac   : > { %v816_v46 = vpop.permute.xlu1 %815 }
 0x211   : > { %v618_v11 = vpop.f32.mrb[0].mxu1 }
 0x212   : > { %v629_v12 = vmul.f32 %v1154_v10, %v618_v11  ;;  %v1052_v13 = vpop.f32.mrb[1].mxu1 }
 0x213   : > { %v621_v14 = vpop.f32.mrb[2].mxu1 }
 0x214   : > { %v630_v15 = vpack.c.bf16 %v629_v12, %v629_v12  ;;  %v1053_v16 = vpop.f32.mrb[3].mxu1 }
 0x216   : > { %v649_v18 = vsel %vm436_vm1, %v630_v15, 0  ;;  %1078 = vmatprep.subr.msk.bf16.mxu0 %vm436_vm1, %v630_v15 }
 0x217   : > { %1055 = vmatpush3.bf16.msra.mxu0 %v649_v18 }
 0x218   : > { %1079 = vmatprep.subr.msk.bf16.mxu0 %vm717_vm9, %v418_v17 }
 0x21a   : > { %1057 = vmatmul.mubr.msk.bf16.vlgmr.msra.gmra.mrb[4].mxu0 %vm641_vm8, %v1143_v19 }
 0x21b   : > { %1061 = vmatpush3.bf16.msra.mxu0 %v719_v21  ;;  %1062 = vmatprep.mubr.msk.bf16.mxu0 %vm710_vm10, %v1144_v20 }
 0x226   : > { %1063 = vmatmul.mubr.msk.bf16.vlgmr.msra.gmra.mrb[4].mxu0 %vm710_vm10, %v1145_v22 }
 0x2f9   : > { %v1064_v26 = vpop.f32.mrb[4].mxu0 }
 0x2fa   : > { %v796_v27 = vadd.f32 %v1064_v26, %v787_v24  ;;  %v755_v28 = vpop.f32.mrb[5].mxu0 }
 0x2fb   : > { %v794_v30 = vadd.f32 %v777_v25, %v755_v28  ;;  %v1065_v31 = vpop.f32.mrb[6].mxu0 }
 0x2fc   : > { %v797_v32 = vadd.f32 %v1065_v31, %v792_v29  ;;  %v758_v33 = vpop.f32.mrb[7].mxu0  ;;  %v800_v35 = vmax.f32 %v796_v27, 0.0 }
 0x2fd   : > { %v795_v34 = vadd.f32 %v782_v23, %v758_v33  ;;  %v798_v37 = vmax.f32 %v794_v30, 0.0 }
 0x2fe   : > { %v801_v36 = vmax.f32 %v797_v32, 0.0 }
 0x2ff   : > { %v799_v38 = vmax.f32 %v795_v34, 0.0 }
 0x300   : > { %v805_v39 = vpack.c.bf16 %v801_v36, %v800_v35 }
 0x301   : > { %v804_v40 = vpack.c.bf16 %v799_v38, %v798_v37 }
 0x303   : > { %1067 = vmatpush3.bf16.msra.mxu1 %v804_v40 }
 0x304   : > { %1068 = vmatprep.subr.bf16.mxu1 %v1235_v0 }
 0x307   : > { %1069 = vmatpush3.bf16.msra.mxu1 %v805_v39 }
 0x30a   : > { %1071 = vmatmul.mubr.msk.bf16.vlgmr.msra.gmra.mrb[4].mxu1 %vm823_vm11, %v1146_v41 }
 0x3dd   : > { %v861_v43 = vpop.f32.mrb[4].mxu1 }
 0x3de   : > { %v862_v44 = vadd.f32 %v861_v43, %v811_v42  ;;  %v1072_v45 = vpop.f32.mrb[5].mxu1 }
 0x3df   : > { %v864_v47 = vpop.f32.mrb[6].mxu1 }
 0x3e0   : > { %v868_v0 = vmax.f32 %v862_v44, 0.0  ;;  %v865_v48 = vadd.f32 %v864_v47, %v816_v46  ;;  %v1073_v49 = vpop.f32.mrb[7].mxu1 }
 0x3e2   : > { %870 = vst [vmem:[%s392_s18] sm:$0xff] %v868_v0  ;;  %v869_v50 = vmax.f32 %v865_v48, 0.0 }
 0x3e4   : > { %871 = vst [vmem:[%s392_s18 + $0x8] sm:$0xff] %v869_v50 }
 0x3e5   : > { %1168 = shalt.err (!%p1165_p5)
}
 0x3e6   : > { %s1169_s15 = scalar_lea.hbm %s1440_s27, 256  ;;  %s1173_s23 = scalar_lea.hbm %s1497_s9, 512 }
 0x3e7   : > { %p1170_p6 = scmp.ne.s32.totalorder %s1440_s27, %s1169_s15  ;;  %p1174_p10 = scmp.lt.u32.totalorder %s1440_s27, %s1497_s9 }
 0x3e8   : > { %p1175_p11 = scmp.lt.u32.totalorder %s1173_s23, %s1169_s15  ;;  %p1177_p13 = scmp.lt.u32.totalorder %s1169_s15, %s1440_s27 }
 0x3e9   : > { %p1171_p7 = pnand %p1170_p6, %p1331_p4 }
 0x3ea   : > { %p1176_p12 = por %p1175_p11, %p1174_p10 }
 0x3eb   : > { %p1172_p9 = pneg %p1171_p7 }
 0x3ec   : > { %p1178_p0 = por %p1177_p13, %p1176_p12 }
 0x3ee   : > { %p1179_p1 = pnand %p1178_p0, %p1172_p9 }
 0x3f0   : > { %1182 = shalt.err (!%p1179_p1)
}
 0x3f1   : > { %s1239_s12 = smov 128   ;;  %s1240_s24 = smov 8  }
 0x3f2   : > { %1080 = dma.vmem_to_hbm [thread:$0]  (%p1331_p4), %s1435_s20, 256, %s1440_s27, %s1442_s28, %s1239_s12, %s1239_s12, %s1240_s24  }
 0x3f3 PF: > { %p1086_p2 = scmp.ge.s32.totalorder %s1233_s14, 2  ;;  %s902_s16 = sand.u32 1, %s1213_s30  }
 0x3f4   : > { %s903_s15 = scalar_lea.sflag [#allocation3], %s902_s16 }
 0x3f5   : > { %p1083_p3 = pnand %p1086_p2, %p1338_p8 }
 0x3f7   : > { %1208 = dma.done.wait (!%p1083_p3), %s903_s15, 256  }
 0x3f8   : > { %1210 = vsyncadd (!%p1083_p3), %s903_s15, 4294967040  ;;  %s22_s14 = sadd.s32 1, %s1233_s14   ;;  %s1504_s30 = smov %s1217_s10 }
 0x3f9   : > { %p19_p5 = scmp.ge.s32.totalorder %s22_s14, 4   ;;  %s1505_s10 = smov %s1221_s11 }
 0x3fa   : > { %s1506_s11 = smov %s1344_s22  ;;  %s1507_s12 = smov %s1229_s13 }
 0x3fb   : > { %s1508_s13 = smov %s1510_s17  ;;  %21 = sbr.rel (!%p19_p5) target bundleno = 4 (0x4), region = 100 }
 0x402   :  { %908 = vsyncpa [#allocation3], 1 }
 0x403   :  { %910 = vsyncpa [#allocation3 + $0x1], 1 }

</bundles_post_ra>
